<compile_context>
chip_gen: v7x
topology: tpu7x:2x2x1
jax: 0.10.0
libtpu: 0.0.40
codegen_flags: <defaults>
</compile_context>

<pallas_src>
import jax
import jax.numpy as jnp
from jax.experimental import pallas as pl
from jax.experimental.pallas import tpu as pltpu

_LANE = 128
_SUBLANE = 8
_BN_EPS = 1e-5


def _round_up(x, m):
    return (x + m - 1) // m * m


# ----------------------------------------------------------------------------
# pltpu.roll shift-convention probe (cached).  We need "out[r] = x[r + s]".
# ----------------------------------------------------------------------------
_ROLL_NEG_SHIFT = None


def _roll_forward_uses_negative_shift():
    """True if pltpu.roll follows the jnp.roll convention (out[i]=x[i-shift])."""
    global _ROLL_NEG_SHIFT
    if _ROLL_NEG_SHIFT is None:
        def probe(x_ref, o_ref):
            o_ref[...] = pltpu.roll(x_ref[...], 1, 0)

        x = jnp.arange(8 * 128, dtype=jnp.float32).reshape(8, 128)
        y = pl.pallas_call(
            probe, out_shape=jax.ShapeDtypeStruct((8, 128), jnp.float32))(x)
        v = float(jax.device_get(y[0, 0]))
        if v == float(7 * 128):      # jnp.roll-like: out[0] = x[-1]
            _ROLL_NEG_SHIFT = True
        elif v == float(1 * 128):    # inverse: out[0] = x[+1]
            _ROLL_NEG_SHIFT = False
        else:
            raise RuntimeError("unexpected pltpu.roll semantics")
    return _ROLL_NEG_SHIFT


def _vmem_budget():
    """(vmem_limit_bytes, max activation-block rows) per TPU generation."""
    try:
        kind = jax.devices()[0].device_kind.lower()
    except Exception:  # pragma: no cover
        kind = ""
    if "v5" in kind or "v6" in kind:
        # 128 MiB physical VMEM, one TensorCore: fewer, larger blocks.
        return 96 * 1024 * 1024, 8192
    # v7x (64 MiB physical) and unknown chips: conservative budget.
    return 48 * 1024 * 1024, 4096


# ----------------------------------------------------------------------------
# Fused stack kernel: all TCN blocks in one kernel, activation stays in VMEM.
# The activation is a flat (rows, lanes) slab: rows = batch_block * t_pad,
# per-batch row stride = t_pad, constant across all layers.
# ----------------------------------------------------------------------------
def _make_stack_kernel(layer_meta, kernel_size, causal, rows, roll_neg):
    """layer_meta: tuple of (dilation, has_residual) per layer (static)."""

    if roll_neg:
        def roll_fwd(v, s):                    # out[r] = v[(r + s) % rows]
            s = s % rows
            return pltpu.roll(v, (rows - s) % rows, 0) if s else v
    else:
        def roll_fwd(v, s):
            s = s % rows
            return pltpu.roll(v, s, 0) if s else v

    def kernel(x_ref, dw_ref, pw_ref, c2_ref, b_ref, out_ref):
        cp = out_ref.shape[-1]
        x = x_ref[...]                         # (rows, c_in_k) f32

        # Static unroll over layers (fine for small stacks; see TODO above).
        for li, (dil, has_res) in enumerate(layer_meta):
            cw = x.shape[-1]                   # current channel width (static)
            dw_l = dw_ref[li]                  # (K, cp) f32
            b_dw = b_ref[3 * li + 0:3 * li + 1, :]   # (1, cp)
            b_pw = b_ref[3 * li + 1:3 * li + 2, :]
            b_c2 = b_ref[3 * li + 2:3 * li + 3, :]

            # --- depthwise dilated conv (BN1 folded), taps via XLU roll -----
            acc = x * dw_l[0:1, :cw]
            for k in range(1, kernel_size):
                acc = acc + roll_fwd(x, k * dil) * dw_l[k:k + 1, :cw]
            h = jnp.maximum(acc + b_dw[:, :cw], 0.0)

            # --- pointwise 1x1 conv (BN2 folded) + ReLU : MXU matmul --------
            pw_l = pw_ref[li]
            pw_l = pw_l if cw == cp else pw_l[:cw, :]
            p = jnp.dot(h.astype(jnp.bfloat16), pw_l,
                        preferred_element_type=jnp.float32)
            p = jnp.maximum(p + b_pw, 0.0)

            # --- TCNBlock conv2 1x1 (BN3 folded) : MXU matmul ---------------
            o = jnp.dot(p.astype(jnp.bfloat16), c2_ref[li],
                        preferred_element_type=jnp.float32)
            o = o + b_c2

            # --- residual (only when in_channels == res_channels) + ReLU ---
            if has_res:
                rf = dil * (kernel_size - 1)
                off = rf if causal else rf // 2
                o = o + roll_fwd(x, off)

            x = jnp.maximum(o, 0.0)

        # Single unmasked, lane-dense store; tail rows hold garbage that the
        # host discards.
        out_ref[...] = x

    return kernel


# ----------------------------------------------------------------------------
# Parameter construction (mirrors the PyTorch module; inference-mode BN).
# ----------------------------------------------------------------------------
def _init_bn(key, c):
    k1, k2, k3, k4 = jax.random.split(key, 4)
    return dict(
        gamma=1.0 + 0.1 * jax.random.normal(k1, (c,), jnp.float32),
        beta=0.1 * jax.random.normal(k2, (c,), jnp.float32),
        mean=0.1 * jax.random.normal(k3, (c,), jnp.float32),
        var=1.0 + 0.1 * jnp.abs(jax.random.normal(k4, (c,), jnp.float32)),
    )


def init_tcn_block_params(key, cin, cres, kernel_size):
    ks = jax.random.split(key, 9)
    return dict(
        dw_w=0.3 * jax.random.normal(ks[0], (kernel_size, cin), jnp.float32),
        dw_b=0.1 * jax.random.normal(ks[1], (cin,), jnp.float32),
        pw_w=0.3 * jax.random.normal(ks[2], (cin, cres), jnp.float32),
        pw_b=0.1 * jax.random.normal(ks[3], (cres,), jnp.float32),
        c2_w=0.3 * jax.random.normal(ks[4], (cres, cres), jnp.float32),
        c2_b=0.1 * jax.random.normal(ks[5], (cres,), jnp.float32),
        bn1=_init_bn(ks[6], cin),    # DSDilatedConv1d.bn1
        bn2=_init_bn(ks[7], cres),   # DSDilatedConv1d.bn2
        bn3=_init_bn(ks[8], cres),   # TCNBlock.bn2
    )


def _bn_scale_bias(bn):
    scale = bn["gamma"] / jnp.sqrt(bn["var"] + _BN_EPS)
    return scale, bn["beta"] - bn["mean"] * scale


def fold_block_params(raw):
    """Fold inference-mode BN affines into the preceding conv weights/biases."""
    s1, b1 = _bn_scale_bias(raw["bn1"])
    s2, b2 = _bn_scale_bias(raw["bn2"])
    s3, b3 = _bn_scale_bias(raw["bn3"])
    return dict(
        dw_w=raw["dw_w"] * s1[None, :],
        dw_b=raw["dw_b"] * s1 + b1,
        pw_w=raw["pw_w"] * s2[None, :],
        pw_b=raw["pw_b"] * s2 + b2,
        c2_w=raw["c2_w"] * s3[None, :],
        c2_b=raw["c2_b"] * s3 + b3,
    )


def build_tcn_stack(key, in_channels, stack_num, stack_size, res_channels,
                    kernel_size, causal):
    dilations = [2 ** l for _ in range(stack_size) for l in range(stack_num)]
    keys = jax.random.split(key, len(dilations))
    layers = []
    cin = in_channels
    for d, k in zip(dilations, keys):
        raw = init_tcn_block_params(k, cin, res_channels, kernel_size)
        layers.append(dict(dilation=int(d), cin=cin, cres=res_channels,
                           raw=raw, folded=fold_block_params(raw)))
        cin = res_channels
    return dict(kernel_size=kernel_size, causal=causal, layers=layers)


def _pack_params(layers, cp, kernel_size):
    """Pack all folded layer params into a few lane-padded arrays."""
    num_layers = len(layers)
    dw_all = jnp.zeros((num_layers, kernel_size, cp), jnp.float32)
    pw_all = jnp.zeros((num_layers, cp, cp), jnp.float32)
    c2_all = jnp.zeros((num_layers, cp, cp), jnp.float32)
    b_all = jnp.zeros((3 * num_layers, cp), jnp.float32)
    for li, layer in enumerate(layers):
        f = layer["folded"]
        cin, cres = layer["cin"], layer["cres"]
        dw_all = dw_all.at[li, :, :cin].set(f["dw_w"])
        pw_all = pw_all.at[li, :cin, :cres].set(f["pw_w"])
        c2_all = c2_all.at[li, :cres, :cres].set(f["c2_w"])
        b_all = b_all.at[3 * li + 0, :cin].set(f["dw_b"])
        b_all = b_all.at[3 * li + 1, :cres].set(f["pw_b"])
        b_all = b_all.at[3 * li + 2, :cres].set(f["c2_b"])
    # matmul weights are consumed as bf16 MXU operands (f32 accumulation)
    return dw_all, pw_all.astype(jnp.bfloat16), c2_all.astype(jnp.bfloat16), b_all


# ----------------------------------------------------------------------------
# Host wrapper: PyTorch-style NCL in/out, one fused pallas_call.
# ----------------------------------------------------------------------------
def tcn_stack_forward(x_ncl, stack, *, batch_block=None):
    """(B, C, T) float32 -> (B, res_channels, T - total_rf) float32."""
    kernel_size = stack["kernel_size"]
    causal = stack["causal"]
    layers = stack["layers"]

    B, C, T = x_ncl.shape
    assert C == layers[0]["cin"], (C, layers[0]["cin"])
    total_rf = sum(l["dilation"] * (kernel_size - 1) for l in layers)
    t_final = T - total_rf
    assert t_final > 0, "sequence shorter than receptive field"

    cp = _round_up(max(max(l["cin"], l["cres"]) for l in layers), _LANE)
    t_pad = _round_up(T, _SUBLANE)

    # Input channel width fed to the kernel: natural width rounded to 16
    # (bf16-friendly matmul K); full 128 lanes only if the first block has a
    # residual (needs the widened input for the residual add).
    layer0_res = layers[0]["cin"] == layers[0]["cres"]
    c_in_k = cp if layer0_res else min(cp, _round_up(C, 16))

    # Per-generation VMEM budget -> batch_block; keep >=2 grid steps if B>=2.
    vmem_limit, rows_cap = _vmem_budget()
    if batch_block is None:
        batch_block = max(1, rows_cap // t_pad)
    batch_block = max(1, min(batch_block, B))
    if B >= 2:
        batch_block = min(batch_block, -(-B // 2))
    b_pad = _round_up(B, batch_block)
    rows_block = batch_block * t_pad
    grid = (b_pad // batch_block,)

    # channels-last, pad time->t_pad / batch->b_pad (channel width stays small),
    # then flatten (batch, time) into rows with a constant per-batch stride.
    x_btc = jnp.transpose(x_ncl, (0, 2, 1)).astype(jnp.float32)
    x_full = jnp.zeros((b_pad, t_pad, c_in_k), jnp.float32).at[:B, :T, :C].set(x_btc)
    x_flat = x_full.reshape(b_pad * t_pad, c_in_k)

    dw_all, pw_all, c2_all, b_all = _pack_params(layers, cp, kernel_size)

    layer_meta = tuple((l["dilation"], l["cin"] == l["cres"]) for l in layers)
    kern = _make_stack_kernel(layer_meta, kernel_size, causal, rows_block,
                              roll_neg=_roll_forward_uses_negative_shift())

    out_flat = pl.pallas_call(
        kern,
        out_shape=jax.ShapeDtypeStruct((b_pad * t_pad, cp), jnp.float32),
        grid=grid,
        in_specs=[
            pl.BlockSpec((rows_block, c_in_k), lambda i: (i, 0)),
            pl.BlockSpec(dw_all.shape, lambda i: (0, 0, 0)),
            pl.BlockSpec(pw_all.shape, lambda i: (0, 0, 0)),
            pl.BlockSpec(c2_all.shape, lambda i: (0, 0, 0)),
            pl.BlockSpec(b_all.shape, lambda i: (0, 0)),
        ],
        out_specs=pl.BlockSpec((rows_block, cp), lambda i: (i, 0)),
        compiler_params=pltpu.CompilerParams(
            dimension_semantics=("parallel",),
            vmem_limit_bytes=vmem_limit),
    )(x_flat, dw_all, pw_all, c2_all, b_all)

    cres = layers[-1]["cres"]
    out = out_flat.reshape(b_pad, t_pad, cp)[:B, :t_final, :cres]
    return jnp.transpose(out, (0, 2, 1))   # -> (B, res_channels, T_out)


# ----------------------------------------------------------------------------
# References.
#   _ref_stack_folded_bf16: mirrors the kernel arithmetic exactly (folded BN,
#       bf16 matmul operands, f32 accumulation) at the original channel sizes.
#   _ref_stack_unfolded_f32: the original module's math (separate BN affine,
#       all f32) — looser check validating BN folding + quantifying bf16 drift.
# ----------------------------------------------------------------------------
def _ref_stack_folded_bf16(x_btc, stack):
    kernel_size, causal = stack["kernel_size"], stack["causal"]
    x = x_btc
    for l in stack["layers"]:
        f, d, cin, cres = l["folded"], l["dilation"], l["cin"], l["cres"]
        rf = d * (kernel_size - 1)
        half = rf // 2
        t_out = x.shape[1] - rf
        acc = jnp.zeros((x.shape[0], t_out, cin), jnp.float32)
        for k in range(kernel_size):
            s = k * d
            acc = acc + x[:, s:s + t_out, :] * f["dw_w"][k]
        h = jnp.maximum(acc + f["dw_b"], 0.0)
        p = jnp.einsum("btc,cd->btd", h.astype(jnp.bfloat16),
                       f["pw_w"].astype(jnp.bfloat16),
                       preferred_element_type=jnp.float32)
        p = jnp.maximum(p + f["pw_b"], 0.0)
        o = jnp.einsum("btc,cd->btd", p.astype(jnp.bfloat16),
                       f["c2_w"].astype(jnp.bfloat16),
                       preferred_element_type=jnp.float32)
        o = o + f["c2_b"]
        if cin == cres:
            res = x[:, rf:rf + t_out, :] if causal else x[:, half:half + t_out, :]
            o = o + res
        x = jnp.maximum(o, 0.0)
    return x


def _ref_stack_unfolded_f32(x_btc, stack):
    kernel_size, causal = stack["kernel_size"], stack["causal"]
    x = x_btc
    for l in stack["layers"]:
        r, d, cin, cres = l["raw"], l["dilation"], l["cin"], l["cres"]
        rf = d * (kernel_size - 1)
        half = rf // 2
        t_out = x.shape[1] - rf
        s1, b1 = _bn_scale_bias(r["bn1"])
        s2, b2 = _bn_scale_bias(r["bn2"])
        s3, b3 = _bn_scale_bias(r["bn3"])
        acc = jnp.zeros((x.shape[0], t_out, cin), jnp.float32)
        for k in range(kernel_size):
            s = k * d
            acc = acc + x[:, s:s + t_out, :] * r["dw_w"][k]
        acc = acc + r["dw_b"]
        h = jnp.maximum(acc * s1 + b1, 0.0)
        p = jnp.einsum("btc,cd->btd", h, r["pw_w"],
                       preferred_element_type=jnp.float32) + r["pw_b"]
        p = jnp.maximum(p * s2 + b2, 0.0)
        o = jnp.einsum("btc,cd->btd", p, r["c2_w"],
                       preferred_element_type=jnp.float32) + r["c2_b"]
        o = o * s3 + b3
        if cin == cres:
            res = x[:, rf:rf + t_out, :] if causal else x[:, half:half + t_out, :]
            o = o + res
        x = jnp.maximum(o, 0.0)
    return x


# ----------------------------------------------------------------------------
if __name__ == "__main__":
    # TCNStack(in_channels=4, stack_num=2, stack_size=1, res_channels=8,
    #          kernel_size=3, causal=True)
    in_channels, stack_num, stack_size = 4, 2, 1
    res_channels, kernel_size, causal = 8, 3, True
    B, T = 2, 32

    root = jax.random.PRNGKey(0)
    k_x, k_p = jax.random.split(root)
    x = jax.random.normal(k_x, (B, in_channels, T), jnp.float32)  # NCL, like torch

    stack = build_tcn_stack(k_p, in_channels, stack_num, stack_size,
                            res_channels, kernel_size, causal)

    out = jax.block_until_ready(tcn_stack_forward(x, stack))

    x_btc = jnp.transpose(x, (0, 2, 1))
    ref_tight = jnp.transpose(_ref_stack_folded_bf16(x_btc, stack), (0, 2, 1))
    ref_loose = jnp.transpose(_ref_stack_unfolded_f32(x_btc, stack), (0, 2, 1))
    jax.block_until_ready((ref_tight, ref_loose))

    assert out.shape == ref_tight.shape, (out.shape, ref_tight.shape)
    # Tight check vs. a reference that uses the same arithmetic contract
    # (folded BN, bf16 matmul operands, f32 accumulation).
    assert jnp.allclose(out, ref_tight, atol=1e-3, rtol=1e-3), \
        "mismatch vs folded/bf16 reference"
    # Loose check vs. the original-module (unfolded BN, all-f32) math —
    # validates the host-side BN folding; slack covers bf16 operand rounding.
    assert jnp.allclose(out, ref_loose, atol=5e-2, rtol=5e-2), \
        "mismatch vs unfolded f32 reference"
    print("KERNEL_OK")
</pallas_src>

<mosaic_0001>
module attributes {stable_mosaic.version = 11 : i64} {
  func.func @probe(%arg0: memref<8x128xf32, #tpu.memory_space<vmem>>, %arg1: memref<8x128xf32, #tpu.memory_space<vmem>>) attributes {dimension_semantics = [], scalar_prefetch = 0 : i64, scratch_operands = 0 : i64, tpu.core_type = #tpu.core_type<tc>} {
    %c0 = arith.constant 0 : index
    %c0_0 = arith.constant 0 : index
    %0 = vector.load %arg0[%c0, %c0_0] : memref<8x128xf32, #tpu.memory_space<vmem>>, vector<8x128xf32>
    %c1_i32 = arith.constant 1 : i32
    %1 = tpu.dynamic_rotate %0 by %c1_i32 dim 0 : vector<8x128xf32>, i32 -> vector<8x128xf32>
    %c0_1 = arith.constant 0 : index
    %c0_2 = arith.constant 0 : index
    %2 = vector.load %arg1[%c0_1, %c0_2] : memref<8x128xf32, #tpu.memory_space<vmem>>, vector<8x128xf32>
    tpu.vector_store %arg1[%c0_1, %c0_2], %1 {strides = array<i32>} : memref<8x128xf32, #tpu.memory_space<vmem>>, vector<8x128xf32>,
    return
  }
}

</mosaic_0001>

<bundles_post_ra>
// kernel: tpu_custom_call.1
= control target key start
LH: loop header
LB: loop body
LE: loop exit
PB: predicated region body
PF: predicated region fallthrough
CT: control target
= control target key end

     0   :  { %6 = vsyncpa [#allocation3], 0  ;;  %s125_s0 = inlined_call_operand.hbm [shape: f32[8,128], index: 0, kind: input, shape index: {}]   ;;  %s126_s1 = inlined_call_operand.hbm [shape: f32[8,128], index: 1, kind: output, shape index: {}]  }
   0x1   :  { %7 = vsyncpa [#allocation4], 0  ;;  %s89_s6 = smov [#allocation2]   ;;  %s41_s10 = scalar_lea.hbm %s125_s0, 128 }
   0x2   :  { %s14_s7 = sshll.u32 %s89_s6, 4  ;;  %p42_p0 = scmp.ne.s32.totalorder %s125_s0, %s41_s10  ;;  %s15_s7 = int_to_ptr.vmem [resolvable:$true] %s14_s7 }
   0x3   :  { %p45_p1 = scmp.lt.u32.totalorder %s41_s10, %s125_s0 }
   0x5   :  { %p47_p2 = pnand %p45_p1, %p42_p0 }
   0x7   :  { %50 = shalt.err (!%p47_p2)
}
   0x8   :  { %s51_s15 = scalar_lea.vmem %s15_s7, 128  ;;  %p56_p4 = scmp.lt.s32.totalorder %s15_s7, %s15_s7 }
   0x9   :  { %p52_p3 = scmp.ne.s32.totalorder %s15_s7, %s51_s15  ;;  %p57_p5 = scmp.lt.s32.totalorder %s51_s15, %s51_s15 }
   0xb   :  { %p58_p6 = por %p57_p5, %p56_p4 }
   0xd   :  { %p59_p7 = pnand %p58_p6, %p52_p3 }
   0xf   :  { %62 = shalt.err (!%p59_p7)
}
  0x10   :  { %17 = dma.hbm_to_vmem [thread:$0]  %s125_s0, 128, %s15_s7, [#allocation3]  }
  0x11   :  { %85 = dma.done.wait [#allocation3], 128  }
  0x12   :  { %86 = vsyncadd [#allocation3], 4294967168  ;;  %s90_s18 = smov [#allocation5]   ;;  %v21_v0 = vld [vmem:[#allocation2] sm:$0xff] }
  0x13   :  { %s30_s19 = sshll.u32 %s90_s18, 4  ;;  %v22_v1 = vrot.slane %v21_v0, 7  ;;  %s31_s19 = int_to_ptr.vmem [resolvable:$true] %s30_s19 }
  0x14   :  { %s63_s20 = scalar_lea.vmem %s31_s19, 128  ;;  %p68_p9 = scmp.lt.s32.totalorder %s31_s19, %s31_s19 }
  0x15   :  { %23 = vst [vmem:[#allocation5] sm:$0xff] %v22_v1  ;;  %p64_p8 = scmp.ne.s32.totalorder %s31_s19, %s63_s20  ;;  %p69_p10 = scmp.lt.s32.totalorder %s63_s20, %s63_s20 }
  0x17   :  { %p70_p11 = por %p69_p10, %p68_p9 }
  0x19   :  { %p71_p12 = pnand %p70_p11, %p64_p8 }
  0x1b   :  { %74 = shalt.err (!%p71_p12)
}
  0x1c   :  { %s75_s23 = scalar_lea.hbm %s126_s1, 128 }
  0x1d   :  { %p76_p13 = scmp.ne.s32.totalorder %s126_s1, %s75_s23  ;;  %p79_p0 = scmp.lt.u32.totalorder %s75_s23, %s126_s1 }
  0x1f   :  { %p81_p1 = pnand %p79_p0, %p76_p13 }
  0x21   :  { %84 = shalt.err (!%p81_p1)
}
  0x22   :  { %33 = dma.vmem_to_hbm [thread:$0]  %s31_s19, 128, %s126_s1, [#allocation4]  }
  0x23   :  { %87 = dma.done.wait [#allocation4], 128  }
  0x24   :  { %88 = vsyncadd [#allocation4], 4294967168 }
  0x25   :  { %37 = vsyncpa [#allocation3], 1 }
  0x26   :  { %38 = vsyncpa [#allocation4], 1 }

</bundles_post_ra>
